<compile_context>
chip_gen: v7x
topology: tpu7x:2x2x1
jax: 0.10.0
libtpu: 0.0.40
codegen_flags: <defaults>
</compile_context>

<pallas_src>
import math

import jax
import jax.numpy as jnp
from jax.experimental import pallas as pl
from jax.experimental.pallas import tpu as pltpu

# ---------------- module configuration (synthetic, deterministic) ----------------
VOCAB = 32          # num_embeddings (word vocab size)
EMB_DIM = 32        # embedding_dim == embedding_size (Lorentz ambient dim, incl. time)
MAX_LEN = 64        # max_len for positional encoding
B, S = 2, 8         # batch, sequence length
C_IN = 1.0          # manifold_in curvature param:  <x,x>_L = -c_in
C_OUT = 2.0         # manifold_out curvature param
RES_SCALE = 1.0     # LResNet(use_scale=True) scalar parameter (deterministic init)
EPS = 1e-7          # module.eps[torch.float32]
MAX_ROWS_PER_TILE = 512   # rows per grid step once B*S grows (single step below this)


# --------------------------------- wrapper + kernel ---------------------------------
def lorentz_embeddings_fwd(source, emb_table, pos_enc, w, b):
    """source: (B, S) int32 tokens (batch_first). Returns (B, S, D) float32."""
    Bb, Ss = source.shape
    V, D = emb_table.shape
    M = Bb * Ss

    # One big tile (single grid step) when the slab is small; 512-row tiles at scale.
    TM = M if M <= MAX_ROWS_PER_TILE else MAX_ROWS_PER_TILE
    n_steps = pl.cdiv(M, TM)
    M_pad = n_steps * TM

    # Only tiny per-row integer columns go to HBM; the float tables stay in their
    # original compact forms (no (M,D) gather, no Bx-duplicated PE slab).
    ids = source.reshape(M, 1).astype(jnp.int32)                       # (M, 1)
    pos = jnp.tile(jnp.arange(Ss, dtype=jnp.int32), Bb).reshape(M, 1)  # (M, 1)
    if M_pad != M:
        ids = jnp.pad(ids, ((0, M_pad - M), (0, 0)))
        pos = jnp.pad(pos, ((0, M_pad - M), (0, 0)))

    pe = pos_enc[:Ss, 0, :]                                            # (S, D)

    # Zero-pad the LorentzLinear weight/bias with a leading column so the MXU
    # result lands directly in lanes 1..D-1 of a lane-aligned (TM, D) tile
    # (column 0 is reserved for the recomputed time component).
    w_pad = jnp.concatenate([jnp.zeros((D, 1), w.dtype), w], axis=1)        # (D, D)
    b_pad = jnp.concatenate([jnp.zeros((1,), b.dtype), b]).reshape(1, D)    # (1, D)

    out_scale = math.sqrt(C_OUT / C_IN)
    sqrt_c_in = math.sqrt(C_IN)

    def kernel(ids_ref, pos_ref, emb_ref, pe_ref, w_ref, b_ref, o_ref):
        ids_col = ids_ref[...]                                   # (TM, 1) int32
        pos_col = pos_ref[...]                                   # (TM, 1) int32

        # --- embedding lookup: one-hot matmul against the VMEM-resident table ---
        tok_oh = (ids_col == jax.lax.broadcasted_iota(jnp.int32, (TM, V), 1)
                  ).astype(jnp.float32)                          # (TM, V)
        x = jnp.dot(tok_oh, emb_ref[...],
                    preferred_element_type=jnp.float32)          # (TM, D)

        # --- positional-encoding lookup: row m -> pe[pos[m]] ---
        pos_oh = (pos_col == jax.lax.broadcasted_iota(jnp.int32, (TM, Ss), 1)
                  ).astype(jnp.float32)                          # (TM, S)
        pe_rows = jnp.dot(pos_oh, pe_ref[...],
                          preferred_element_type=jnp.float32)    # (TM, D)

        # --- LResNet(use_scale=True): residual add + Lorentz re-projection ---
        z = x + RES_SCALE * pe_rows
        zz = z * z
        # <z,z>_L = -z0^2 + sum_{i>0} z_i^2 = sum(z^2) - 2*z0^2  (full-lane reduce)
        inner = jnp.sum(zz, axis=-1, keepdims=True) - 2.0 * zz[:, 0:1]
        r = (sqrt_c_in * z) * jax.lax.rsqrt(jnp.maximum(jnp.abs(inner), 1e-8))

        # --- LorentzLinear: (TM,D) @ (D,D) on MXU; col 0 of W/b is zero ---
        s = jnp.dot(r, w_ref[...],
                    preferred_element_type=jnp.float32) + b_ref[...]        # (TM, D)
        t = jnp.sqrt(jnp.maximum(jnp.sum(s * s, axis=-1, keepdims=True) + C_IN, EPS))
        col0 = jax.lax.broadcasted_iota(jnp.int32, (TM, D), 1) == 0
        o_ref[...] = jnp.where(col0, t, s) * out_scale           # curvature map in->out

    out = pl.pallas_call(
        kernel,
        out_shape=jax.ShapeDtypeStruct((M_pad, D), jnp.float32),
        grid_spec=pltpu.PrefetchScalarGridSpec(
            num_scalar_prefetch=0,
            grid=(n_steps,),
            in_specs=[
                pl.BlockSpec((TM, 1), lambda i: (i, 0)),   # token ids
                pl.BlockSpec((TM, 1), lambda i: (i, 0)),   # sequence positions
                pl.BlockSpec((V, D), lambda i: (0, 0)),    # embedding table (grid-invariant)
                pl.BlockSpec((Ss, D), lambda i: (0, 0)),   # positional encodings (grid-invariant)
                pl.BlockSpec((D, D), lambda i: (0, 0)),    # zero-padded LorentzLinear weight
                pl.BlockSpec((1, D), lambda i: (0, 0)),    # zero-padded bias
            ],
            out_specs=pl.BlockSpec((TM, D), lambda i: (i, 0)),
        ),
        compiler_params=pltpu.CompilerParams(
            # Don't shard a 1-2 step grid across TensorCores; enable megacore
            # sharding only when there is real per-core work.
            dimension_semantics=("parallel",) if n_steps > 2 else ("arbitrary",)),
    )(ids, pos, emb_table, pe, w_pad, b_pad)

    return out[:M].reshape(Bb, Ss, D)


# ------------------------------ pure-JAX reference ------------------------------
def ref_forward(source, emb_table, pos_enc, w, b):
    x = emb_table[source]                                   # (B, S, D) exact gather
    pe = pos_enc[: source.shape[1], 0, :][None, :, :]       # (1, S, D)
    z = x + RES_SCALE * pe
    inner = jnp.sum(z[..., 1:] ** 2, -1, keepdims=True) - z[..., :1] ** 2
    r = math.sqrt(C_IN) * z / jnp.sqrt(jnp.maximum(jnp.abs(inner), 1e-8))
    s = r @ w + b
    t = jnp.sqrt(jnp.maximum(jnp.sum(s * s, -1, keepdims=True) + C_IN, EPS))
    return jnp.concatenate([t, s], -1) * math.sqrt(C_OUT / C_IN)


# ------------------------ deterministic parameter init ------------------------
def lorentz_random_normal(key, shape, std, c):
    """Sample space components ~ N(0, std), set time = sqrt(c + ||space||^2)."""
    *lead, d = shape
    space = jax.random.normal(key, (*lead, d - 1), dtype=jnp.float32) * std
    time = jnp.sqrt(c + jnp.sum(space * space, axis=-1, keepdims=True))
    return jnp.concatenate([time, space], axis=-1)


if __name__ == "__main__":
    key = jax.random.PRNGKey(0)
    k_emb, k_pos, k_w, k_src = jax.random.split(key, 4)

    emb_table = lorentz_random_normal(k_emb, (VOCAB, EMB_DIM), 1.0, C_IN)
    pos_enc = lorentz_random_normal(k_pos, (MAX_LEN, 1, EMB_DIM), math.sqrt(0.02), C_IN)
    # Round lookup tables to bf16-representable f32 values so the in-kernel one-hot
    # matmul lookups are bit-exact regardless of how the MXU decomposes f32 passes.
    emb_table = emb_table.astype(jnp.bfloat16).astype(jnp.float32)
    pos_enc = pos_enc.astype(jnp.bfloat16).astype(jnp.float32)

    w = (jax.random.normal(k_w, (EMB_DIM, EMB_DIM - 1), dtype=jnp.float32)
         / math.sqrt(EMB_DIM))
    bias = jnp.zeros((EMB_DIM - 1,), dtype=jnp.float32)

    source = jax.random.randint(k_src, (B, S), 0, VOCAB, dtype=jnp.int32)
    assert int(source.max()) < VOCAB, "Token index cannot exceed vocab size"

    out = lorentz_embeddings_fwd(source, emb_table, pos_enc, w, bias)
    out = jax.block_until_ready(out)

    ref = ref_forward(source, emb_table, pos_enc, w, bias)
    assert out.shape == (B, S, EMB_DIM)
    assert jnp.allclose(out, ref, atol=1e-5, rtol=1e-5), "mismatch vs reference"

    print("KERNEL_OK")
</pallas_src>

<mosaic_0001>
module attributes {stable_mosaic.version = 11 : i64} {
  func.func @kernel(%arg0: i32, %arg1: memref<16x1xi32, #tpu.memory_space<vmem>>, %arg2: memref<16x1xi32, #tpu.memory_space<vmem>>, %arg3: memref<32x32xf32, #tpu.memory_space<vmem>>, %arg4: memref<8x32xf32, #tpu.memory_space<vmem>>, %arg5: memref<32x32xf32, #tpu.memory_space<vmem>>, %arg6: memref<1x32xf32, #tpu.memory_space<vmem>>, %arg7: memref<16x32xf32, #tpu.memory_space<vmem>>) attributes {dimension_semantics = [#tpu.dimension_semantics<arbitrary>], iteration_bounds = array<i64: 1>, scalar_prefetch = 0 : i64, scratch_operands = 0 : i64, tpu.core_type = #tpu.core_type<tc>, window_params = [{transform_indices = @transform_0, window_bounds = array<i64: 16, 1>}, {transform_indices = @transform_1, window_bounds = array<i64: 16, 1>}, {pipeline_mode = #tpu.pipeline_mode<synchronous>, transform_indices = @transform_2, window_bounds = array<i64: 32, 32>}, {pipeline_mode = #tpu.pipeline_mode<synchronous>, transform_indices = @transform_3, window_bounds = array<i64: 8, 32>}, {pipeline_mode = #tpu.pipeline_mode<synchronous>, transform_indices = @transform_4, window_bounds = array<i64: 32, 32>}, {pipeline_mode = #tpu.pipeline_mode<synchronous>, transform_indices = @transform_5, window_bounds = array<i64: 1, 32>}, {transform_indices = @transform_6, window_bounds = array<i64: 16, 32>}]} {
    %c0 = arith.constant 0 : index
    %c0_0 = arith.constant 0 : index
    %0 = vector.load %arg1[%c0, %c0_0] : memref<16x1xi32, #tpu.memory_space<vmem>>, vector<16x1xi32>
    %c0_1 = arith.constant 0 : index
    %c0_2 = arith.constant 0 : index
    %1 = vector.load %arg2[%c0_1, %c0_2] : memref<16x1xi32, #tpu.memory_space<vmem>>, vector<16x1xi32>
    %2 = tpu.iota {dimensions = array<i32: 1>} : vector<16x32xi32>
    %3 = vector.broadcast %0 : vector<16x1xi32> to vector<16x32xi32>
    %4 = arith.cmpi eq, %3, %2 : vector<16x32xi32>
    %5 = arith.extui %4 : vector<16x32xi1> to vector<16x32xi32>
    %6 = arith.sitofp %5 : vector<16x32xi32> to vector<16x32xf32>
    %c0_3 = arith.constant 0 : index
    %c0_4 = arith.constant 0 : index
    %7 = vector.load %arg3[%c0_3, %c0_4] : memref<32x32xf32, #tpu.memory_space<vmem>>, vector<32x32xf32>
    %cst = arith.constant dense<0.000000e+00> : vector<16x32xf32>
    %8 = tpu.matmul %6, %7, %cst {dimension_numbers = #tpu.dot_dimension_numbers<[1], [0], [0], [1], [0, 0, 1, 1], [], []>} : vector<16x32xf32>, vector<32x32xf32>, vector<16x32xf32> -> vector<16x32xf32>
    %9 = tpu.iota {dimensions = array<i32: 1>} : vector<16x8xi32>
    %10 = vector.broadcast %1 : vector<16x1xi32> to vector<16x8xi32>
    %11 = arith.cmpi eq, %10, %9 : vector<16x8xi32>
    %12 = arith.extui %11 : vector<16x8xi1> to vector<16x8xi32>
    %13 = arith.sitofp %12 : vector<16x8xi32> to vector<16x8xf32>
    %c0_5 = arith.constant 0 : index
    %c0_6 = arith.constant 0 : index
    %14 = vector.load %arg4[%c0_5, %c0_6] : memref<8x32xf32, #tpu.memory_space<vmem>>, vector<8x32xf32>
    %cst_7 = arith.constant dense<0.000000e+00> : vector<16x32xf32>
    %15 = tpu.matmul %13, %14, %cst_7 {dimension_numbers = #tpu.dot_dimension_numbers<[1], [0], [0], [1], [0, 0, 1, 1], [], []>} : vector<16x8xf32>, vector<8x32xf32>, vector<16x32xf32> -> vector<16x32xf32>
    %cst_8 = arith.constant 1.000000e+00 : f32
    %16 = vector.broadcast %cst_8 : f32 to vector<16x32xf32>
    %17 = arith.mulf %16, %15 : vector<16x32xf32>
    %18 = arith.addf %8, %17 : vector<16x32xf32>
    %19 = arith.mulf %18, %18 : vector<16x32xf32>
    %cst_9 = arith.constant dense<0.000000e+00> : vector<16xf32>
    %20 = vector.multi_reduction <add>, %19, %cst_9 [1] : vector<16x32xf32> to vector<16xf32>
    %21 = vector.shape_cast %20 : vector<16xf32> to vector<16x1xf32>
    %22 = vector.extract_strided_slice %19 {offsets = [0, 0], sizes = [16, 1], strides = [1, 1]} : vector<16x32xf32> to vector<16x1xf32>
    %cst_10 = arith.constant 2.000000e+00 : f32
    %23 = vector.broadcast %cst_10 : f32 to vector<16x1xf32>
    %24 = arith.mulf %23, %22 : vector<16x1xf32>
    %25 = arith.subf %21, %24 : vector<16x1xf32>
    %cst_11 = arith.constant 1.000000e+00 : f32
    %26 = vector.broadcast %cst_11 : f32 to vector<16x32xf32>
    %27 = arith.mulf %26, %18 : vector<16x32xf32>
    %28 = math.absf %25 : vector<16x1xf32>
    %cst_12 = arith.constant 9.99999993E-9 : f32
    %29 = vector.broadcast %cst_12 : f32 to vector<16x1xf32>
    %30 = arith.maximumf %28, %29 : vector<16x1xf32>
    %31 = math.rsqrt %30 : vector<16x1xf32>
    %32 = vector.broadcast %31 : vector<16x1xf32> to vector<16x32xf32>
    %33 = arith.mulf %27, %32 : vector<16x32xf32>
    %c0_13 = arith.constant 0 : index
    %c0_14 = arith.constant 0 : index
    %34 = vector.load %arg5[%c0_13, %c0_14] : memref<32x32xf32, #tpu.memory_space<vmem>>, vector<32x32xf32>
    %cst_15 = arith.constant dense<0.000000e+00> : vector<16x32xf32>
    %35 = tpu.matmul %33, %34, %cst_15 {dimension_numbers = #tpu.dot_dimension_numbers<[1], [0], [0], [1], [0, 0, 1, 1], [], []>} : vector<16x32xf32>, vector<32x32xf32>, vector<16x32xf32> -> vector<16x32xf32>
    %c0_16 = arith.constant 0 : index
    %c0_17 = arith.constant 0 : index
    %36 = vector.load %arg6[%c0_16, %c0_17] : memref<1x32xf32, #tpu.memory_space<vmem>>, vector<1x32xf32>
    %37 = vector.broadcast %36 : vector<1x32xf32> to vector<16x32xf32>
    %38 = arith.addf %35, %37 : vector<16x32xf32>
    %39 = arith.mulf %38, %38 : vector<16x32xf32>
    %cst_18 = arith.constant dense<0.000000e+00> : vector<16xf32>
    %40 = vector.multi_reduction <add>, %39, %cst_18 [1] : vector<16x32xf32> to vector<16xf32>
    %41 = vector.shape_cast %40 : vector<16xf32> to vector<16x1xf32>
    %cst_19 = arith.constant 1.000000e+00 : f32
    %42 = vector.broadcast %cst_19 : f32 to vector<16x1xf32>
    %43 = arith.addf %41, %42 : vector<16x1xf32>
    %cst_20 = arith.constant 1.000000e-07 : f32
    %44 = vector.broadcast %cst_20 : f32 to vector<16x1xf32>
    %45 = arith.maximumf %43, %44 : vector<16x1xf32>
    %46 = math.sqrt %45 : vector<16x1xf32>
    %47 = tpu.iota {dimensions = array<i32: 1>} : vector<16x32xi32>
    %c0_i32 = arith.constant 0 : i32
    %48 = vector.broadcast %c0_i32 : i32 to vector<16x32xi32>
    %49 = arith.cmpi eq, %47, %48 : vector<16x32xi32>
    %50 = vector.shape_cast %46 : vector<16x1xf32> to vector<16x1xf32>
    %51 = vector.broadcast %50 : vector<16x1xf32> to vector<16x32xf32>
    %52 = arith.select %49, %51, %38 : vector<16x32xi1>, vector<16x32xf32>
    %cst_21 = arith.constant 1.41421354 : f32
    %53 = vector.broadcast %cst_21 : f32 to vector<16x32xf32>
    %54 = arith.mulf %52, %53 : vector<16x32xf32>
    %c0_22 = arith.constant 0 : index
    %c0_23 = arith.constant 0 : index
    %55 = vector.load %arg7[%c0_22, %c0_23] : memref<16x32xf32, #tpu.memory_space<vmem>>, vector<16x32xf32>
    tpu.vector_store %arg7[%c0_22, %c0_23], %54 {strides = array<i32>} : memref<16x32xf32, #tpu.memory_space<vmem>>, vector<16x32xf32>,
    return
  }
  func.func @transform_0(%arg0: i32) -> (i32, i32) {
    %c0_i32 = arith.constant 0 : i32
    %c0_i32_0 = arith.constant 0 : i32
    return %arg0, %c0_i32 : i32, i32
  }
  func.func @transform_1(%arg0: i32) -> (i32, i32) {
    %c0_i32 = arith.constant 0 : i32
    %c0_i32_0 = arith.constant 0 : i32
    return %arg0, %c0_i32 : i32, i32
  }
  func.func @transform_2(%arg0: i32) -> (i32, i32) {
    %c0_i32 = arith.constant 0 : i32
    %c0_i32_0 = arith.constant 0 : i32
    %c0_i32_1 = arith.constant 0 : i32
    return %c0_i32, %c0_i32_0 : i32, i32
  }
  func.func @transform_3(%arg0: i32) -> (i32, i32) {
    %c0_i32 = arith.constant 0 : i32
    %c0_i32_0 = arith.constant 0 : i32
    %c0_i32_1 = arith.constant 0 : i32
    return %c0_i32, %c0_i32_0 : i32, i32
  }
  func.func @transform_4(%arg0: i32) -> (i32, i32) {
    %c0_i32 = arith.constant 0 : i32
    %c0_i32_0 = arith.constant 0 : i32
    %c0_i32_1 = arith.constant 0 : i32
    return %c0_i32, %c0_i32_0 : i32, i32
  }
  func.func @transform_5(%arg0: i32) -> (i32, i32) {
    %c0_i32 = arith.constant 0 : i32
    %c0_i32_0 = arith.constant 0 : i32
    %c0_i32_1 = arith.constant 0 : i32
    return %c0_i32, %c0_i32_0 : i32, i32
  }
  func.func @transform_6(%arg0: i32) -> (i32, i32) {
    %c0_i32 = arith.constant 0 : i32
    %c0_i32_0 = arith.constant 0 : i32
    return %arg0, %c0_i32 : i32, i32
  }
}

</mosaic_0001>

<bundles_post_ra>
// kernel: tpu_custom_call.1
= control target key start
LH: loop header
LB: loop body
LE: loop exit
PB: predicated region body
PF: predicated region fallthrough
CT: control target
= control target key end

     0   :  { %11 = vsyncpa [#allocation3], 0  ;;  %s662_s0 = inlined_call_operand.vmem [shape: s32[16,1], index: 0, kind: input, shape index: {}]   ;;  %s663_s1 = inlined_call_operand.vmem [shape: s32[16,1], index: 1, kind: input, shape index: {}]   ;;  %s664_s2 = inlined_call_operand.vmem [shape: f32[32,32], index: 2, kind: input, shape index: {}]   ;;  %s665_s3 = inlined_call_operand.vmem [shape: f32[8,32], index: 3, kind: input, shape index: {}]   ;;  %s666_s4 = inlined_call_operand.hbm [shape: f32[32,32], index: 4, kind: input, shape index: {}]   ;;  %s667_s5 = inlined_call_operand.vmem [shape: f32[1,32], index: 5, kind: input, shape index: {}]   ;;  %s668_s6 = inlined_call_operand.hbm [shape: f32[16,32], index: 6, kind: output, shape index: {}]  }
   0x1   :  { %12 = vsyncpa [#allocation4], 0  ;;  %s544_s21 = smov [#allocation2]   ;;  %s496_s25 = scalar_lea.hbm %s666_s4, 512 }
   0x2   :  { %s26_s22 = sshll.u32 %s544_s21, 4  ;;  %p497_p0 = scmp.ne.s32.totalorder %s666_s4, %s496_s25  ;;  %s27_s22 = int_to_ptr.vmem [resolvable:$true] %s26_s22 }
   0x3   :  { %p500_p1 = scmp.lt.u32.totalorder %s496_s25, %s666_s4 }
   0x5   :  { %p502_p2 = pnand %p500_p1, %p497_p0 }
   0x7   :  { %505 = shalt.err (!%p502_p2)
}
   0x8   :  { %s506_s30 = scalar_lea.vmem %s27_s22, 512  ;;  %p511_p4 = scmp.lt.s32.totalorder %s27_s22, %s27_s22 }
   0x9   :  { %p507_p3 = scmp.ne.s32.totalorder %s27_s22, %s506_s30  ;;  %p512_p5 = scmp.lt.s32.totalorder %s506_s30, %s506_s30 }
   0xb   :  { %p513_p6 = por %p512_p5, %p511_p4 }
   0xd   :  { %p514_p7 = pnand %p513_p6, %p507_p3 }
   0xf   :  { %517 = shalt.err (!%p514_p7)
}
  0x10   :  { %s545_s7 = smov 128   ;;  %s546_s8 = smov 8  }
  0x11   :  { %32 = dma.hbm_to_vmem [thread:$0]  %s666_s4, 512, %s27_s22, [#allocation3], %s545_s7, %s545_s7, %s546_s8  }
  0x12   :  { %540 = dma.done.wait [#allocation3], 512  }
  0x13   :  { %541 = vsyncadd [#allocation3], 4294966784  ;;  %v547_v0 = vmov 0   ;;  %v40_v1 = vld [vmem:[%s663_s1] sm:$0xff]  ;;  %v41_v3 = vld [vmem:[%s663_s1 + $0x8] sm:$0xff]  ;;  %v42_v9 = vlaneseq  ;;  %vm73_vm0 = vcmask 64512  }
  0x14   :  { %486 = vset.pattern.permute.xlu0 %v547_v0  ;;  %487 = vset.pattern.permute.xlu1 %v547_v0  ;;  %v38_v2 = vld [vmem:[%s662_s0] sm:$0xff]  ;;  %v39_v4 = vld [vmem:[%s662_s0 + $0x8] sm:$0xff]  ;;  %v548_v13 = vmov 0.0   ;;  %v58_v15 = vld [vmem:[%s664_s2 + $0x10] sm:$0xff]  ;;  %vm155_vm4 = vcmask 261120  }
  0x15   :  { %61 = vperm.xlu0 %486, %v40_v1   ;;  %45 = vperm.xlu1 %487, %v38_v2   ;;  %v72_v5 = vld [vmem:[%s665_s3] sm:$0xff]  ;;  %v57_v7 = vld [vmem:[%s664_s2 + $0x8] sm:$0xff]  ;;  %v621_v10 = vand.u32 127, %v42_v9  ;;  %v59_v16 = vld [vmem:[%s664_s2 + $0x18] sm:$0xff] }
  0x16   :  { %435 = vmatprep.subr.mxu0 %v72_v5  ;;  %v56_v6 = vld [vmem:[%s664_s2] sm:$0xff]  ;;  %v466_v19 = vpack.c.bf16 %v59_v16, %v58_v15  ;;  %v267_v29 = vld [vmem:[#allocation2] sm:$0xff]  ;;  %v268_v30 = vld [vmem:[#allocation2 + $0x8] sm:$0xff] }
  0x17   :  { %v462_v8 = vpack.c.bf16 %v57_v7, %v56_v6  ;;  %436 = vmatpush3.msra.mxu0 %v72_v5  ;;  %v470_v31 = vpack.c.bf16 %v268_v30, %v267_v29  ;;  %v269_v42 = vld [vmem:[#allocation2 + $0x10] sm:$0xff]  ;;  %v270_v43 = vld [vmem:[#allocation2 + $0x18] sm:$0xff]  ;;  %vm385_vm7 = vcmp.eq.s32.totalorder %v621_v10, 0 }
  0x18   :  { %v474_v44 = vpack.c.bf16 %v270_v43, %v269_v42  ;;  %v417_v51 = vld [vmem:[%s667_s5] ss:$0 sm:$0xff]  ;;  %s549_s5 = smov [#allocation5]  }
  0x19   :  { %64 = vperm.xlu0 %486, %v41_v3   ;;  %48 = vperm.xlu1 %487, %v39_v4   ;;  %s397_s26 = sshll.u32 %s549_s5, 4  ;;  %s398_s26 = int_to_ptr.vmem [resolvable:$true] %s397_s26 }
  0x1a   :  { %463 = vmatprep.subr.bf16.mxu0 %v462_v8  ;;  %471 = vmatprep.subr.bf16.mxu1 %v470_v31  ;;  %s518_s27 = scalar_lea.vmem %s398_s26, 256  ;;  %p523_p9 = scmp.lt.s32.totalorder %s398_s26, %s398_s26 }
  0x1b   :  { %473 = vmatpush3.bf16.msra.mxu1 %v470_v31  ;;  %p519_p8 = scmp.ne.s32.totalorder %s398_s26, %s518_s27  ;;  %p524_p10 = scmp.lt.s32.totalorder %s518_s27, %s518_s27 }
  0x1c   :  { %475 = vmatprep.subr.bf16.mxu1 %v474_v44 }
  0x1d   :  { %p525_p11 = por %p524_p10, %p523_p9 }
  0x1f   :  { %477 = vmatpush3.bf16.msra.mxu1 %v474_v44  ;;  %p526_p12 = pnand %p525_p11, %p519_p8 }
  0x94   :  { %v62_v11 = vpop.permute.xlu0 %61  ;;  %v46_v12 = vpop.permute.xlu1 %45 }
  0x95   :  { %vm66_vm1 = vcmp.eq.s32.totalorder %v62_v11, %v621_v10  ;;  %vm50_vm2 = vcmp.eq.s32.totalorder %v46_v12, %v621_v10 }
  0x96   :  { %v411_v14 = vsel %vm66_vm1, 1.0, %v548_v13  ;;  %v409_v18 = vsel %vm50_vm2, 1.0, %v548_v13 }
  0x97   :  { %437 = vmatprep.mubr.msk.f32.mxu0 %vm73_vm0, %v411_v14 }
  0x98   :  { %v65_v17 = vpop.permute.xlu0 %64  ;;  %v49_v21 = vpop.permute.xlu1 %48 }
  0x99   :  { %vm67_vm3 = vcmp.eq.s32.totalorder %v65_v17, %v621_v10  ;;  %vm51_vm5 = vcmp.eq.s32.totalorder %v49_v21, %v621_v10 }
  0x9a   :  { %v412_v20 = vsel %vm67_vm3, 1.0, %v548_v13  ;;  %v410_v22 = vsel %vm51_vm5, 1.0, %v548_v13 }
  0x9b   :  { %438 = vmatmul.mubr.msk.f32.vlgmr.msra.gmra.mrb[0].mxu0 %vm73_vm0, %v412_v20 }
  0x9c   :  { %465 = vmatpush3.bf16.msra.mxu0 %v462_v8  ;;  %448 = vmatprep.mubr.msk.f32.mxu0 %vm155_vm4, %v409_v18 }
  0x9d   :  { %467 = vmatprep.subr.bf16.mxu0 %v466_v19 }
  0xa0   :  { %469 = vmatpush3.bf16.msra.mxu0 %v466_v19 }
  0xa3   :  { %449 = vmatmul.mubr.msk.f32.vlgmr.msra.gmra.mrb[0].mxu0 %vm155_vm4, %v410_v22 }
 0x176   :  { %v450_v23 = vpop.f32.mrb[0].mxu0 }
 0x177   :  { %v238_v24 = vmul.f32 %v450_v23, %v450_v23  ;;  %v228_v25 = vpop.f32.mrb[1].mxu0 }
 0x178   :  { %v237_v26 = vmul.f32 %v228_v25, %v228_v25 }
 0x179   :  { %v242_v27 = vsel %vm155_vm4, %v238_v24, 0.0  ;;  %v246_v32 = vmul.f32 2.0, %v238_v24 }
 0x17a   :  { %243 = vadd.xlane.f32.xlu1 %v242_v27  ;;  %v239_v28 = vsel %vm155_vm4, %v237_v26, 0.0  ;;  %v245_v34 = vmul.f32 2.0, %v237_v26 }
 0x17b   :  { %240 = vadd.xlane.f32.xlu0 %v239_v28 }
 0x207   :  { %v244_v33 = vpop.xlane.xlu1 %243 }
 0x208   :  { %v248_v35 = vsub.f32 %v244_v33, %v246_v32  ;;  %v241_v36 = vpop.xlane.xlu0 %240 }
 0x209   :  { %v247_v37 = vsub.f32 %v241_v36, %v245_v34 }
 0x20a   :  { %v250_v38 = vand.u32 2147483647, %v248_v35 }
 0x20b   :  { %v249_v39 = vand.u32 2147483647, %v247_v37 }
 0x20c   :  { %v252_v40 = vmax.f32 %v250_v38, 1e-08 }
 0x20d   :  { %v251_v41 = vmax.f32 %v249_v39, 1e-08 }
 0x20e   :  { %488 = vrsqrt.f32 %v252_v40 }
 0x20f   :  { %490 = vrsqrt.f32 %v251_v41 }
 0x218   :  { %v489_v45 = vpop.eup %488 }
 0x219   :  { %v491_v46 = vpop.eup %490  ;;  %262 = vperm.xlu1 %487, %v489_v45  }
 0x21a   :  { %257 = vperm.xlu0 %486, %v491_v46  }
 0x298   :  { %v263_v47 = vpop.permute.xlu1 %262 }
 0x299   :  { %v258_v48 = vpop.permute.xlu0 %257  ;;  %v266_v50 = vmul.f32 %v450_v23, %v263_v47 }
 0x29a   :  { %v265_v49 = vmul.f32 %v258_v48, %v228_v25 }
 0x29c   :  { %459 = vmatprep.mubr.msk.f32.mxu1 %vm155_vm4, %v265_v49 }
 0x29d   :  { %460 = vmatmul.mubr.msk.f32.vlgmr.msra.gmra.mrb[0].mxu1 %vm155_vm4, %v266_v50 }
 0x370   :  { %v461_v52 = vpop.f32.mrb[0].mxu1 }
 0x371   :  { %v356_v53 = vadd.f32 %v461_v52, %v417_v51  ;;  %v350_v54 = vpop.f32.mrb[1].mxu1 }
 0x372   :  { %v351_v55 = vadd.f32 %v417_v51, %v350_v54 }
 0x373   :  { %v360_v56 = vmul.f32 %v356_v53, %v356_v53 }
 0x374   :  { %v359_v57 = vmul.f32 %v351_v55, %v351_v55 }
 0x375   :  { %v364_v58 = vsel %vm155_vm4, %v360_v56, 0.0 }
 0x376   :  { %365 = vadd.xlane.f32.xlu1 %v364_v58  ;;  %v361_v59 = vsel %vm155_vm4, %v359_v57, 0.0 }
 0x377   :  { %362 = vadd.xlane.f32.xlu0 %v361_v59 }
 0x403   :  { %v366_v60 = vpop.xlane.xlu1 %365 }
 0x404   :  { %v368_v61 = vadd.f32 1.0, %v366_v60  ;;  %v363_v62 = vpop.xlane.xlu0 %362 }
 0x405   :  { %v367_v63 = vadd.f32 1.0, %v363_v62 }
 0x406   :  { %v370_v0 = vmax.f32 %v368_v61, 1e-07 }
 0x407   :  { %v369_v1 = vmax.f32 %v367_v63, 1e-07 }
 0x408   :  { %492 = vrsqrt.f32 %v370_v0  ;;  %vm380_vm6 = vcmp.eq.f32.partialorder %v370_v0, inf  ;;  %v383_v6 = vand.u32 2147483648, %v370_v0  ;;  %vm382_vm9 = vcmp.eq.f32.partialorder %v370_v0, 0.0 }
 0x409   :  { %494 = vrsqrt.f32 %v369_v1  ;;  %vm373_vm8 = vcmp.eq.f32.partialorder %v369_v1, inf  ;;  %v376_v7 = vand.u32 2147483648, %v369_v1  ;;  %vm375_vm10 = vcmp.eq.f32.partialorder %v369_v1, 0.0 }
 0x412   :  { %v493_v2 = vpop.eup %492 }
 0x413   :  { %v495_v3 = vpop.eup %494  ;;  %v379_v4 = vmul.f32 %v493_v2, %v370_v0 }
 0x414   :  { %v372_v5 = vmul.f32 %v495_v3, %v369_v1 }
 0x415   :  { %v381_v8 = vsel %vm380_vm6, %v370_v0, %v379_v4 }
 0x416   :  { %v374_v9 = vsel %vm373_vm8, %v369_v1, %v372_v5  ;;  %v384_v11 = vsel %vm382_vm9, %v383_v6, %v381_v8 }
 0x417   :  { %v377_v12 = vsel %vm375_vm10, %v376_v7, %v374_v9  ;;  %v387_v13 = vsel %vm385_vm7, %v384_v11, %v356_v53 }
 0x418   :  { %v386_v14 = vsel %vm385_vm7, %v377_v12, %v351_v55  ;;  %v389_v15 = vmul.f32 1.4142135, %v387_v13 }
 0x419   :  { %v388_v16 = vmul.f32 1.4142135, %v386_v14 }
 0x41a   :  { %391 = vst.msk [vmem:[#allocation5 + $0x8] sm:$0xff] %vm155_vm4, %v389_v15 }
 0x41b   :  { %390 = vst.msk [vmem:[#allocation5] sm:$0xff] %vm155_vm4, %v388_v16 }
 0x41c   :  { %529 = shalt.err (!%p526_p12)
}
 0x41d   :  { %s530_s30 = scalar_lea.hbm %s668_s6, 256 }
 0x41e   :  { %p531_p13 = scmp.ne.s32.totalorder %s668_s6, %s530_s30  ;;  %p534_p0 = scmp.lt.u32.totalorder %s530_s30, %s668_s6 }
 0x420   :  { %p536_p1 = pnand %p534_p0, %p531_p13 }
 0x422   :  { %539 = shalt.err (!%p536_p1)
}
 0x423   :  { %403 = dma.vmem_to_hbm [thread:$0]  %s398_s26, 256, %s668_s6, [#allocation4], %s545_s7, %s545_s7, %s546_s8  }
 0x424   :  { %542 = dma.done.wait [#allocation4], 256  }
 0x425   :  { %543 = vsyncadd [#allocation4], 4294967040 }
 0x426   :  { %407 = vsyncpa [#allocation3], 1 }
 0x427   :  { %408 = vsyncpa [#allocation4], 1 }

</bundles_post_ra>
